<compile_context>
chip_gen: v5e
topology: v5e:2x2
jax: 0.10.0
libtpu: 0.0.40
codegen_flags: <defaults>
</compile_context>

<pallas_src>
import functools

import numpy as np

import jax
import jax.numpy as jnp
from jax.experimental import pallas as pl
from jax.experimental.pallas import tpu as pltpu


# ----------------------------------------------------------------------------
# Fused encoder kernel: conv1+ReLU -> conv2+ReLU -> [fc_mu | fc_logvar]
# ----------------------------------------------------------------------------
def _encoder_kernel(cols_ref, mask_ref, w1_ref, b1_ref, w2_ref, b2_ref,
                    wfc_ref, bfc_ref, out_ref):
    # Stage 1: all (conv2 tap x conv1 tap) contributions in ONE GEMM.
    #   cols_ref : [256, T]  composite im2col columns (lane-dense)
    #   w1_ref   : [64, 256] block-diagonal conv1 weights (one block per conv2 tap)
    a = jnp.dot(w1_ref[...], cols_ref[...], preferred_element_type=jnp.float32)
    a = jnp.maximum(a + b1_ref[...], 0.0) * mask_ref[...]     # ReLU(conv1), conv2 pad mask

    # Stage 2: conv2 over all taps in ONE GEMM: [8,64] x [64,T].
    h2 = jnp.dot(w2_ref[...], a, preferred_element_type=jnp.float32)
    h2 = jnp.maximum(h2 + b2_ref[...], 0.0)                   # [cout2, T]

    # Stage 3: fused fc_mu/fc_logvar via a batch-block-diagonal weight:
    # 8 lane-dense [1,T] x [T, ipt*nfc] GEMMs (one per conv2 channel).
    acc = bfc_ref[...]                                        # [1, ipt*nfc]
    for c in range(h2.shape[0]):
        acc = acc + jnp.dot(h2[c:c + 1, :], wfc_ref[c],
                            preferred_element_type=jnp.float32)
    out_ref[...] = acc                                        # single lane-dense store


# ----------------------------------------------------------------------------
# Wrapper: static im2col via strided slices + weight repacking (trace-time).
# ----------------------------------------------------------------------------
def encoder_forward(params, x):
    """Pallas TPU forward of the PyTorch Encoder. Returns (mu, logvar)."""
    B, cin, H, W = x.shape
    assert cin == 1 and H == 28 and W == 28, "Encoder expects MNIST 1x28x28 input"
    k, stride, pad = 4, 2, 1
    cout1 = params["conv1_b"].shape[0]                 # w
    cout2 = params["conv2_b"].shape[0]                 # 2w
    q = params["fc_mu_b"].shape[0]
    nfc = 2 * q                                        # mu ++ logvar

    ho1 = (H + 2 * pad - k) // stride + 1              # 14
    wo1 = (W + 2 * pad - k) // stride + 1              # 14
    ho2 = (ho1 + 2 * pad - k) // stride + 1            # 7
    wo2 = (wo1 + 2 * pad - k) // stride + 1            # 7
    sp2 = ho2 * wo2                                    # 49
    n_taps = k * k                                     # 16
    K_stack = n_taps * cin * k * k                     # 256
    M_rows = n_taps * cout1                            # 64 (w=4)

    IMG_COLS = 64                                      # per-image column group (49 -> 64)
    ipt = min(8, 2 * ((B + 1) // 2))                   # images per 128-aligned lane tile
    tile_cols = ipt * IMG_COLS
    B_pad = ((B + ipt - 1) // ipt) * ipt
    total_cols = B_pad * IMG_COLS
    ntiles = total_cols // tile_cols

    xf = x.astype(jnp.float32)

    # Composite conv2∘conv1 im2col built from static strided slices (no gather).
    # Composite input row for (oh2, kh2, kh1) = 4*oh2 + 2*kh2 + kh1 in a 3-padded image.
    xbig = jnp.pad(xf[:, 0], ((0, B_pad - B), (3, 3), (3, 3)))        # [B_pad, 34, 34]
    rows = []
    for kh2 in range(k):
        for kw2 in range(k):
            for kh1 in range(k):
                for kw1 in range(k):
                    dr, dc = 2 * kh2 + kh1, 2 * kw2 + kw1
                    patch = xbig[:, dr:dr + 4 * ho2:4, dc:dc + 4 * wo2:4]  # [B_pad,7,7]
                    row = jnp.pad(patch.reshape(B_pad, sp2),
                                  ((0, 0), (0, IMG_COLS - sp2)))
                    rows.append(row.reshape(total_cols))
    cols = jnp.stack(rows, axis=0)                                    # [256, total_cols]

    # Static mask: zero the conv2 zero-padding border, per-image padded columns
    # and padded batch images (applied AFTER ReLU(conv1+bias)).
    mask_np = np.zeros((n_taps, B_pad, IMG_COLS), np.float32)
    oh = np.arange(ho2)
    ow = np.arange(wo2)
    for kh2 in range(k):
        for kw2 in range(k):
            rv = (2 * oh + kh2 - 1 >= 0) & (2 * oh + kh2 - 1 < ho1)
            cv = (2 * ow + kw2 - 1 >= 0) & (2 * ow + kw2 - 1 < wo1)
            m = (rv[:, None] & cv[None, :]).astype(np.float32).reshape(sp2)
            mask_np[kh2 * k + kw2, :B, :sp2] = m[None, :]
    mask = jnp.asarray(
        np.repeat(mask_np.reshape(n_taps, total_cols), cout1, axis=0))  # [64, total_cols]

    # Weight repacking.
    w1m = params["conv1_w"].reshape(cout1, cin * k * k).astype(jnp.float32)
    W1blk = jnp.kron(jnp.eye(n_taps, dtype=jnp.float32), w1m)           # [64, 256]
    b1t = jnp.tile(params["conv1_b"].reshape(cout1, 1).astype(jnp.float32),
                   (n_taps, 1))                                         # [64, 1]
    W2big = (jnp.transpose(params["conv2_w"], (0, 2, 3, 1))
             .reshape(cout2, n_taps * cout1).astype(jnp.float32))       # [8, 64]
    b2 = params["conv2_b"].reshape(cout2, 1).astype(jnp.float32)

    # Batch-block-diagonal FC weight: zero for padded columns / cross-image slots.
    wfc_cat = jnp.concatenate([params["fc_mu_w"], params["fc_logvar_w"]],
                              axis=0).astype(jnp.float32)               # [nfc, cout2*49]
    wfc_csn = jnp.transpose(wfc_cat.reshape(nfc, cout2, sp2), (1, 2, 0))  # [cout2,49,nfc]
    wfc_pad = jnp.pad(wfc_csn, ((0, 0), (0, IMG_COLS - sp2), (0, 0)))     # [cout2,64,nfc]
    Wblk = (jnp.einsum("cmn,jk->cjmkn", wfc_pad, jnp.eye(ipt, dtype=jnp.float32))
            .reshape(cout2, tile_cols, ipt * nfc))                        # [8,tile,ipt*nfc]
    bfc = jnp.tile(jnp.concatenate([params["fc_mu_b"], params["fc_logvar_b"]])
                   .reshape(1, nfc).astype(jnp.float32), (1, ipt))        # [1, ipt*nfc]

    flops = ntiles * (2 * M_rows * K_stack * tile_cols
                      + 2 * cout2 * M_rows * tile_cols
                      + 2 * cout2 * tile_cols * ipt * nfc)
    bytes_accessed = 4 * int(cols.size + mask.size + W1blk.size + b1t.size
                             + W2big.size + b2.size + Wblk.size + bfc.size
                             + ntiles * ipt * nfc)

    out = pl.pallas_call(
        _encoder_kernel,
        out_shape=jax.ShapeDtypeStruct((ntiles, ipt * nfc), jnp.float32),
        grid=(ntiles,),
        in_specs=[
            pl.BlockSpec((K_stack, tile_cols), lambda i: (0, i)),            # im2col cols
            pl.BlockSpec((M_rows, tile_cols), lambda i: (0, i)),             # pad mask
            pl.BlockSpec((M_rows, K_stack), lambda i: (0, 0)),               # W1blk
            pl.BlockSpec((M_rows, 1), lambda i: (0, 0)),                     # b1 tiled
            pl.BlockSpec((cout2, M_rows), lambda i: (0, 0)),                 # W2big
            pl.BlockSpec((cout2, 1), lambda i: (0, 0)),                      # b2
            pl.BlockSpec((cout2, tile_cols, ipt * nfc), lambda i: (0, 0, 0)),  # FC Wblk
            pl.BlockSpec((1, ipt * nfc), lambda i: (0, 0)),                  # FC bias
        ],
        out_specs=pl.BlockSpec((1, ipt * nfc), lambda i: (i, 0)),
        compiler_params=pltpu.CompilerParams(dimension_semantics=("parallel",)),
        cost_estimate=pl.CostEstimate(flops=flops, transcendentals=0,
                                      bytes_accessed=bytes_accessed),
    )(cols, mask, W1blk, b1t, W2big, b2, Wblk, bfc)

    out = out.reshape(B_pad, nfc)[:B]
    return out[:, :q], out[:, q:]


# ----------------------------------------------------------------------------
# Plain-JAX reference (mirrors PyTorch semantics) for a correctness check.
# ----------------------------------------------------------------------------
def _reference_forward(params, x):
    dn = ("NCHW", "OIHW", "NCHW")
    h = jax.lax.conv_general_dilated(x, params["conv1_w"], (2, 2),
                                     [(1, 1), (1, 1)], dimension_numbers=dn)
    h = jax.nn.relu(h + params["conv1_b"][None, :, None, None])
    h = jax.lax.conv_general_dilated(h, params["conv2_w"], (2, 2),
                                     [(1, 1), (1, 1)], dimension_numbers=dn)
    h = jax.nn.relu(h + params["conv2_b"][None, :, None, None])
    hf = h.reshape(h.shape[0], -1)
    mu = hf @ params["fc_mu_w"].T + params["fc_mu_b"]
    logvar = hf @ params["fc_logvar_w"].T + params["fc_logvar_b"]
    return mu, logvar


def init_params(key, w, q):
    ks = jax.random.split(key, 8)

    def rnd(k, shape, scale):
        return (scale * jax.random.normal(k, shape)).astype(jnp.float32)

    D = w * 2 * 7 * 7
    return {
        "conv1_w": rnd(ks[0], (w, 1, 4, 4), 0.10),
        "conv1_b": rnd(ks[1], (w,), 0.10),
        "conv2_w": rnd(ks[2], (w * 2, w, 4, 4), 0.10),
        "conv2_b": rnd(ks[3], (w * 2,), 0.10),
        "fc_mu_w": rnd(ks[4], (q, D), 0.05),          # PyTorch Linear: [out, in]
        "fc_mu_b": rnd(ks[5], (q,), 0.05),
        "fc_logvar_w": rnd(ks[6], (q, D), 0.05),
        "fc_logvar_b": rnd(ks[7], (q,), 0.05),
    }


if __name__ == "__main__":
    w_ch, q = 4, 8       # small channel / latent sizes
    batch = 2            # MNIST 28x28 required by fc input dim w*2*7*7

    key = jax.random.PRNGKey(0)
    k_params, k_x = jax.random.split(key)
    params = init_params(k_params, w_ch, q)
    x = jax.random.normal(k_x, (batch, 1, 28, 28), dtype=jnp.float32)

    fwd = jax.jit(encoder_forward)
    mu, logvar = fwd(params, x)
    jax.block_until_ready((mu, logvar))

    assert mu.shape == (batch, q) and logvar.shape == (batch, q)
    mu_ref, logvar_ref = _reference_forward(params, x)
    assert jnp.allclose(mu, mu_ref, atol=1e-3, rtol=1e-3)
    assert jnp.allclose(logvar, logvar_ref, atol=1e-3, rtol=1e-3)
    print("KERNEL_OK")
</pallas_src>

<mosaic_0001>
module attributes {stable_mosaic.version = 11 : i64} {
  func.func @_encoder_kernel(%arg0: i32, %arg1: memref<256x128xf32, #tpu.memory_space<vmem>>, %arg2: memref<64x128xf32, #tpu.memory_space<vmem>>, %arg3: memref<64x256xf32, #tpu.memory_space<vmem>>, %arg4: memref<64x1xf32, #tpu.memory_space<vmem>>, %arg5: memref<8x64xf32, #tpu.memory_space<vmem>>, %arg6: memref<8x1xf32, #tpu.memory_space<vmem>>, %arg7: memref<8x128x32xf32, #tpu.memory_space<vmem>>, %arg8: memref<1x32xf32, #tpu.memory_space<vmem>>, %arg9: memref<1x32xf32, #tpu.memory_space<vmem>>) attributes {dimension_semantics = [#tpu.dimension_semantics<parallel>], iteration_bounds = array<i64: 1>, scalar_prefetch = 0 : i64, scratch_operands = 0 : i64, tpu.core_type = #tpu.core_type<tc>, window_params = [{transform_indices = @transform_0, window_bounds = array<i64: 256, 128>}, {transform_indices = @transform_1, window_bounds = array<i64: 64, 128>}, {pipeline_mode = #tpu.pipeline_mode<synchronous>, transform_indices = @transform_2, window_bounds = array<i64: 64, 256>}, {pipeline_mode = #tpu.pipeline_mode<synchronous>, transform_indices = @transform_3, window_bounds = array<i64: 64, 1>}, {pipeline_mode = #tpu.pipeline_mode<synchronous>, transform_indices = @transform_4, window_bounds = array<i64: 8, 64>}, {pipeline_mode = #tpu.pipeline_mode<synchronous>, transform_indices = @transform_5, window_bounds = array<i64: 8, 1>}, {pipeline_mode = #tpu.pipeline_mode<synchronous>, transform_indices = @transform_6, window_bounds = array<i64: 8, 128, 32>}, {pipeline_mode = #tpu.pipeline_mode<synchronous>, transform_indices = @transform_7, window_bounds = array<i64: 1, 32>}, {transform_indices = @transform_8, window_bounds = array<i64: 1, 32>}]} {
    %c0 = arith.constant 0 : index
    %c0_0 = arith.constant 0 : index
    %0 = vector.load %arg3[%c0, %c0_0] : memref<64x256xf32, #tpu.memory_space<vmem>>, vector<64x256xf32>
    %c0_1 = arith.constant 0 : index
    %c0_2 = arith.constant 0 : index
    %1 = vector.load %arg1[%c0_1, %c0_2] : memref<256x128xf32, #tpu.memory_space<vmem>>, vector<256x128xf32>
    %cst = arith.constant dense<0.000000e+00> : vector<64x128xf32>
    %2 = tpu.matmul %0, %1, %cst {dimension_numbers = #tpu.dot_dimension_numbers<[1], [0], [0], [1], [0, 0, 1, 1], [], []>} : vector<64x256xf32>, vector<256x128xf32>, vector<64x128xf32> -> vector<64x128xf32>
    %c0_3 = arith.constant 0 : index
    %c0_4 = arith.constant 0 : index
    %3 = vector.load %arg4[%c0_3, %c0_4] : memref<64x1xf32, #tpu.memory_space<vmem>>, vector<64x1xf32>
    %4 = vector.broadcast %3 : vector<64x1xf32> to vector<64x128xf32>
    %5 = arith.addf %2, %4 : vector<64x128xf32>
    %cst_5 = arith.constant 0.000000e+00 : f32
    %6 = vector.broadcast %cst_5 : f32 to vector<64x128xf32>
    %7 = arith.maximumf %5, %6 : vector<64x128xf32>
    %c0_6 = arith.constant 0 : index
    %c0_7 = arith.constant 0 : index
    %8 = vector.load %arg2[%c0_6, %c0_7] : memref<64x128xf32, #tpu.memory_space<vmem>>, vector<64x128xf32>
    %9 = arith.mulf %7, %8 : vector<64x128xf32>
    %c0_8 = arith.constant 0 : index
    %c0_9 = arith.constant 0 : index
    %10 = vector.load %arg5[%c0_8, %c0_9] : memref<8x64xf32, #tpu.memory_space<vmem>>, vector<8x64xf32>
    %cst_10 = arith.constant dense<0.000000e+00> : vector<8x128xf32>
    %11 = tpu.matmul %10, %9, %cst_10 {dimension_numbers = #tpu.dot_dimension_numbers<[1], [0], [0], [1], [0, 0, 1, 1], [], []>} : vector<8x64xf32>, vector<64x128xf32>, vector<8x128xf32> -> vector<8x128xf32>
    %c0_11 = arith.constant 0 : index
    %c0_12 = arith.constant 0 : index
    %12 = vector.load %arg6[%c0_11, %c0_12] : memref<8x1xf32, #tpu.memory_space<vmem>>, vector<8x1xf32>
    %13 = vector.broadcast %12 : vector<8x1xf32> to vector<8x128xf32>
    %14 = arith.addf %11, %13 : vector<8x128xf32>
    %cst_13 = arith.constant 0.000000e+00 : f32
    %15 = vector.broadcast %cst_13 : f32 to vector<8x128xf32>
    %16 = arith.maximumf %14, %15 : vector<8x128xf32>
    %c0_14 = arith.constant 0 : index
    %c0_15 = arith.constant 0 : index
    %17 = vector.load %arg8[%c0_14, %c0_15] : memref<1x32xf32, #tpu.memory_space<vmem>>, vector<1x32xf32>
    %18 = vector.extract_strided_slice %16 {offsets = [0, 0], sizes = [1, 128], strides = [1, 1]} : vector<8x128xf32> to vector<1x128xf32>
    %c0_16 = arith.constant 0 : index
    %c0_17 = arith.constant 0 : index
    %c0_18 = arith.constant 0 : index
    %19 = vector.load %arg7[%c0_16, %c0_17, %c0_18] : memref<8x128x32xf32, #tpu.memory_space<vmem>>, vector<1x128x32xf32>
    %20 = vector.shape_cast %19 : vector<1x128x32xf32> to vector<128x32xf32>
    %cst_19 = arith.constant dense<0.000000e+00> : vector<1x32xf32>
    %21 = tpu.matmul %18, %20, %cst_19 {dimension_numbers = #tpu.dot_dimension_numbers<[1], [0], [0], [1], [0, 0, 1, 1], [], []>} : vector<1x128xf32>, vector<128x32xf32>, vector<1x32xf32> -> vector<1x32xf32>
    %22 = arith.addf %17, %21 : vector<1x32xf32>
    %23 = vector.extract_strided_slice %16 {offsets = [1, 0], sizes = [1, 128], strides = [1, 1]} : vector<8x128xf32> to vector<1x128xf32>
    %c1 = arith.constant 1 : index
    %c0_20 = arith.constant 0 : index
    %c0_21 = arith.constant 0 : index
    %24 = vector.load %arg7[%c1, %c0_20, %c0_21] : memref<8x128x32xf32, #tpu.memory_space<vmem>>, vector<1x128x32xf32>
    %25 = vector.shape_cast %24 : vector<1x128x32xf32> to vector<128x32xf32>
    %cst_22 = arith.constant dense<0.000000e+00> : vector<1x32xf32>
    %26 = tpu.matmul %23, %25, %cst_22 {dimension_numbers = #tpu.dot_dimension_numbers<[1], [0], [0], [1], [0, 0, 1, 1], [], []>} : vector<1x128xf32>, vector<128x32xf32>, vector<1x32xf32> -> vector<1x32xf32>
    %27 = arith.addf %22, %26 : vector<1x32xf32>
    %28 = vector.extract_strided_slice %16 {offsets = [2, 0], sizes = [1, 128], strides = [1, 1]} : vector<8x128xf32> to vector<1x128xf32>
    %c2 = arith.constant 2 : index
    %c0_23 = arith.constant 0 : index
    %c0_24 = arith.constant 0 : index
    %29 = vector.load %arg7[%c2, %c0_23, %c0_24] : memref<8x128x32xf32, #tpu.memory_space<vmem>>, vector<1x128x32xf32>
    %30 = vector.shape_cast %29 : vector<1x128x32xf32> to vector<128x32xf32>
    %cst_25 = arith.constant dense<0.000000e+00> : vector<1x32xf32>
    %31 = tpu.matmul %28, %30, %cst_25 {dimension_numbers = #tpu.dot_dimension_numbers<[1], [0], [0], [1], [0, 0, 1, 1], [], []>} : vector<1x128xf32>, vector<128x32xf32>, vector<1x32xf32> -> vector<1x32xf32>
    %32 = arith.addf %27, %31 : vector<1x32xf32>
    %33 = vector.extract_strided_slice %16 {offsets = [3, 0], sizes = [1, 128], strides = [1, 1]} : vector<8x128xf32> to vector<1x128xf32>
    %c3 = arith.constant 3 : index
    %c0_26 = arith.constant 0 : index
    %c0_27 = arith.constant 0 : index
    %34 = vector.load %arg7[%c3, %c0_26, %c0_27] : memref<8x128x32xf32, #tpu.memory_space<vmem>>, vector<1x128x32xf32>
    %35 = vector.shape_cast %34 : vector<1x128x32xf32> to vector<128x32xf32>
    %cst_28 = arith.constant dense<0.000000e+00> : vector<1x32xf32>
    %36 = tpu.matmul %33, %35, %cst_28 {dimension_numbers = #tpu.dot_dimension_numbers<[1], [0], [0], [1], [0, 0, 1, 1], [], []>} : vector<1x128xf32>, vector<128x32xf32>, vector<1x32xf32> -> vector<1x32xf32>
    %37 = arith.addf %32, %36 : vector<1x32xf32>
    %38 = vector.extract_strided_slice %16 {offsets = [4, 0], sizes = [1, 128], strides = [1, 1]} : vector<8x128xf32> to vector<1x128xf32>
    %c4 = arith.constant 4 : index
    %c0_29 = arith.constant 0 : index
    %c0_30 = arith.constant 0 : index
    %39 = vector.load %arg7[%c4, %c0_29, %c0_30] : memref<8x128x32xf32, #tpu.memory_space<vmem>>, vector<1x128x32xf32>
    %40 = vector.shape_cast %39 : vector<1x128x32xf32> to vector<128x32xf32>
    %cst_31 = arith.constant dense<0.000000e+00> : vector<1x32xf32>
    %41 = tpu.matmul %38, %40, %cst_31 {dimension_numbers = #tpu.dot_dimension_numbers<[1], [0], [0], [1], [0, 0, 1, 1], [], []>} : vector<1x128xf32>, vector<128x32xf32>, vector<1x32xf32> -> vector<1x32xf32>
    %42 = arith.addf %37, %41 : vector<1x32xf32>
    %43 = vector.extract_strided_slice %16 {offsets = [5, 0], sizes = [1, 128], strides = [1, 1]} : vector<8x128xf32> to vector<1x128xf32>
    %c5 = arith.constant 5 : index
    %c0_32 = arith.constant 0 : index
    %c0_33 = arith.constant 0 : index
    %44 = vector.load %arg7[%c5, %c0_32, %c0_33] : memref<8x128x32xf32, #tpu.memory_space<vmem>>, vector<1x128x32xf32>
    %45 = vector.shape_cast %44 : vector<1x128x32xf32> to vector<128x32xf32>
    %cst_34 = arith.constant dense<0.000000e+00> : vector<1x32xf32>
    %46 = tpu.matmul %43, %45, %cst_34 {dimension_numbers = #tpu.dot_dimension_numbers<[1], [0], [0], [1], [0, 0, 1, 1], [], []>} : vector<1x128xf32>, vector<128x32xf32>, vector<1x32xf32> -> vector<1x32xf32>
    %47 = arith.addf %42, %46 : vector<1x32xf32>
    %48 = vector.extract_strided_slice %16 {offsets = [6, 0], sizes = [1, 128], strides = [1, 1]} : vector<8x128xf32> to vector<1x128xf32>
    %c6 = arith.constant 6 : index
    %c0_35 = arith.constant 0 : index
    %c0_36 = arith.constant 0 : index
    %49 = vector.load %arg7[%c6, %c0_35, %c0_36] : memref<8x128x32xf32, #tpu.memory_space<vmem>>, vector<1x128x32xf32>
    %50 = vector.shape_cast %49 : vector<1x128x32xf32> to vector<128x32xf32>
    %cst_37 = arith.constant dense<0.000000e+00> : vector<1x32xf32>
    %51 = tpu.matmul %48, %50, %cst_37 {dimension_numbers = #tpu.dot_dimension_numbers<[1], [0], [0], [1], [0, 0, 1, 1], [], []>} : vector<1x128xf32>, vector<128x32xf32>, vector<1x32xf32> -> vector<1x32xf32>
    %52 = arith.addf %47, %51 : vector<1x32xf32>
    %53 = vector.extract_strided_slice %16 {offsets = [7, 0], sizes = [1, 128], strides = [1, 1]} : vector<8x128xf32> to vector<1x128xf32>
    %c7 = arith.constant 7 : index
    %c0_38 = arith.constant 0 : index
    %c0_39 = arith.constant 0 : index
    %54 = vector.load %arg7[%c7, %c0_38, %c0_39] : memref<8x128x32xf32, #tpu.memory_space<vmem>>, vector<1x128x32xf32>
    %55 = vector.shape_cast %54 : vector<1x128x32xf32> to vector<128x32xf32>
    %cst_40 = arith.constant dense<0.000000e+00> : vector<1x32xf32>
    %56 = tpu.matmul %53, %55, %cst_40 {dimension_numbers = #tpu.dot_dimension_numbers<[1], [0], [0], [1], [0, 0, 1, 1], [], []>} : vector<1x128xf32>, vector<128x32xf32>, vector<1x32xf32> -> vector<1x32xf32>
    %57 = arith.addf %52, %56 : vector<1x32xf32>
    %c0_41 = arith.constant 0 : index
    %c0_42 = arith.constant 0 : index
    %58 = vector.load %arg9[%c0_41, %c0_42] : memref<1x32xf32, #tpu.memory_space<vmem>>, vector<1x32xf32>
    tpu.vector_store %arg9[%c0_41, %c0_42], %57 {strides = array<i32>} : memref<1x32xf32, #tpu.memory_space<vmem>>, vector<1x32xf32>,
    return
  }
  func.func @transform_0(%arg0: i32) -> (i32, i32) {
    %c0_i32 = arith.constant 0 : i32
    %c0_i32_0 = arith.constant 0 : i32
    return %c0_i32, %arg0 : i32, i32
  }
  func.func @transform_1(%arg0: i32) -> (i32, i32) {
    %c0_i32 = arith.constant 0 : i32
    %c0_i32_0 = arith.constant 0 : i32
    return %c0_i32, %arg0 : i32, i32
  }
  func.func @transform_2(%arg0: i32) -> (i32, i32) {
    %c0_i32 = arith.constant 0 : i32
    %c0_i32_0 = arith.constant 0 : i32
    %c0_i32_1 = arith.constant 0 : i32
    return %c0_i32, %c0_i32_0 : i32, i32
  }
  func.func @transform_3(%arg0: i32) -> (i32, i32) {
    %c0_i32 = arith.constant 0 : i32
    %c0_i32_0 = arith.constant 0 : i32
    %c0_i32_1 = arith.constant 0 : i32
    return %c0_i32, %c0_i32_0 : i32, i32
  }
  func.func @transform_4(%arg0: i32) -> (i32, i32) {
    %c0_i32 = arith.constant 0 : i32
    %c0_i32_0 = arith.constant 0 : i32
    %c0_i32_1 = arith.constant 0 : i32
    return %c0_i32, %c0_i32_0 : i32, i32
  }
  func.func @transform_5(%arg0: i32) -> (i32, i32) {
    %c0_i32 = arith.constant 0 : i32
    %c0_i32_0 = arith.constant 0 : i32
    %c0_i32_1 = arith.constant 0 : i32
    return %c0_i32, %c0_i32_0 : i32, i32
  }
  func.func @transform_6(%arg0: i32) -> (i32, i32, i32) {
    %c0_i32 = arith.constant 0 : i32
    %c0_i32_0 = arith.constant 0 : i32
    %c0_i32_1 = arith.constant 0 : i32
    %c0_i32_2 = arith.constant 0 : i32
    return %c0_i32, %c0_i32_0, %c0_i32_1 : i32, i32, i32
  }
  func.func @transform_7(%arg0: i32) -> (i32, i32) {
    %c0_i32 = arith.constant 0 : i32
    %c0_i32_0 = arith.constant 0 : i32
    %c0_i32_1 = arith.constant 0 : i32
    return %c0_i32, %c0_i32_0 : i32, i32
  }
  func.func @transform_8(%arg0: i32) -> (i32, i32) {
    %c0_i32 = arith.constant 0 : i32
    %c0_i32_0 = arith.constant 0 : i32
    return %arg0, %c0_i32 : i32, i32
  }
}

</mosaic_0001>

<bundles_post_ra>
// kernel: mul.4
= control target key start
LH: loop header
LB: loop body
LE: loop exit
PB: predicated region body
PF: predicated region fallthrough
CT: control target
= control target key end

     0   :  { %s52_s14 = smov 4   ;;  %s53_s15 = smov 8   ;;  %vm19_vm0 = vcmask 31744   ;;  %vm25_vm1 = vcmask 130144   ;;  %vm31_vm2 = vcmask 97344   ;;  %vm37_vm3 = vcmask 64544   ;;  %s79_s0 = inlined_call_operand.vmem [shape: f32[4,1,4,4], index: 0, kind: input, shape index: {}]   ;;  %s80_s1 = inlined_call_operand.vmem [shape: f32[4,16], index: 1, kind: output, shape index: {}]  }
   0x1   :  { %v45_v0 = vld [vmem:[%s79_s0 + $0xc] sm:$0xf]  ;;  %v46_v1 = vld [vmem:[%s79_s0 + $0x8] sm:$0xf]  ;;  %v47_v2 = vld [vmem:[%s79_s0 + $0x4] sm:$0xf] }
   0x2   :  { %7 = vst [vmem:[#allocation1 + $0x18] sm:$0xf] %v45_v0  ;;  %v16_v3 = vld [vmem:[%s79_s0] sm:$0xf]  ;;  %s51_s0 = smov 12  }
   0x3   :  { %11 = vst [vmem:[#allocation1 + $0x10] sm:$0xf] %v46_v1 }
   0x4   :  { %15 = vst [vmem:[#allocation1 + $0x8] sm:$0xf] %v47_v2 }
   0x5   :  { %17 = vst [vmem:[#allocation1] sm:$0xf] %v16_v3 }
   0xc   :  { %v22_v4 = vld [vmem:[#allocation1 + $0x3] ss:$8 sm:$0xf]   ;;  %v34_v5 = vld [vmem:[#allocation1 + $0x1] ss:$8 sm:$0xf]  }
   0xd   :  { %23 = vrot.lane.b32.xlu0 %v22_v4, %s51_s0  ;;  %35 = vrot.lane.b32.xlu1 %v34_v5, %s52_s14  ;;  %v28_v6 = vld [vmem:[#allocation1 + $0x2] ss:$8 sm:$0xf]   ;;  %v18_v7 = vld [vmem:[#allocation1] ss:$8 sm:$0xf]  }
   0xe   :  { %20 = vst.msk [vmem:[#allocation0] sm:$0xf] %vm19_vm0, %v18_v7  }
  0x15   :  { %29 = vrot.lane.b32.xlu0 %v28_v6, %s53_s15 }
  0x7f   :  { %v24_v8 = vpop.permute.xlu0 %23   ;;  %v36_v9 = vpop.permute.xlu1 %35  }
  0x80   :  { %26 = vst.msk [vmem:[#allocation0] sm:$0xf] %vm25_vm1, %v24_v8  }
  0x87   :  { %v30_v10 = vpop.permute.xlu0 %29  }
  0x88   :  { %32 = vst.msk [vmem:[#allocation0] sm:$0xf] %vm31_vm2, %v30_v10  }
  0x89   :  { %38 = vst.msk [vmem:[#allocation0] sm:$0xf] %vm37_vm3, %v36_v9  }
  0x90   :  { %v41_v11 = vld [vmem:[#allocation0] sm:$0xf] }
  0x91   :  { %44 = vst [vmem:[%s80_s1] sm:$0xf] %v41_v11 }

// kernel: encoder_forward.1
= control target key start
LH: loop header
LB: loop body
LE: loop exit
PB: predicated region body
PF: predicated region fallthrough
CT: control target
= control target key end

     0   :  { %v705_v3 = vmov 0   ;;  %vm238_vm0 = vcmask 523264   ;;  %vm582_vm1 = vcmask 253952   ;;  %s1355_s0 = inlined_call_operand.vmem [shape: f32[256,128], index: 0, kind: input, shape index: {}]   ;;  %s1356_s3 = inlined_call_operand.vmem [shape: f32[64,1], index: 3, kind: input, shape index: {}]   ;;  %s1357_s2 = inlined_call_operand.vmem [shape: f32[64,256], index: 2, kind: input, shape index: {}]   ;;  %s1358_s5 = inlined_call_operand.vmem [shape: f32[8,1], index: 5, kind: input, shape index: {}]   ;;  %s1359_s6 = inlined_call_operand.vmem [shape: f32[8,128,32], index: 6, kind: input, shape index: {}]   ;;  %s1360_s1 = inlined_call_operand.vmem [shape: f32[64,128], index: 1, kind: input, shape index: {}]   ;;  %s1361_s4 = inlined_call_operand.vmem [shape: f32[8,64], index: 4, kind: input, shape index: {}]   ;;  %s1362_s7 = inlined_call_operand.vmem [shape: f32[1,32], index: 7, kind: input, shape index: {}]   ;;  %s1363_s8 = inlined_call_operand.vmem [shape: f32[1,32], index: 8, kind: output, shape index: {}]  }
   0x1   :  { %v60_v0 = vld [vmem:[%s1355_s0 + $0x78] sm:$0xff]  ;;  %v59_v1 = vld [vmem:[%s1355_s0 + $0x70] sm:$0xff]  ;;  %703 = vset.pattern.permute.xlu1 %v705_v3  ;;  %702 = vset.pattern.permute.xlu0 %v705_v3  ;;  %v58_v5 = vld [vmem:[%s1355_s0 + $0x68] sm:$0xff] }
   0x2   :  { %v76_v2 = vld [vmem:[%s1355_s0 + $0xf8] sm:$0xff]  ;;  %125 = vmatpush.msra.mxu0 %v60_v0  ;;  %v75_v4 = vld [vmem:[%s1355_s0 + $0xf0] sm:$0xff]  ;;  %v74_v6 = vld [vmem:[%s1355_s0 + $0xe8] sm:$0xff]  ;;  %704 = vset.pattern.permute.xlu2 %v705_v3 }
   0x3   :  { %166 = vmatpush.msra.mxu1 %v76_v2  ;;  %v57_v7 = vld [vmem:[%s1355_s0 + $0x60] sm:$0xff]  ;;  %v56_v9 = vld [vmem:[%s1355_s0 + $0x58] sm:$0xff]  ;;  %v55_v11 = vld [vmem:[%s1355_s0 + $0x50] sm:$0xff] }
   0x4   :  { %126 = vmatpush.msra.mxu0 %v59_v1  ;;  %v73_v8 = vld [vmem:[%s1355_s0 + $0xe0] sm:$0xff]  ;;  %v72_v10 = vld [vmem:[%s1355_s0 + $0xd8] sm:$0xff]  ;;  %v71_v12 = vld [vmem:[%s1355_s0 + $0xd0] sm:$0xff] }
   0x5   :  { %167 = vmatpush.msra.mxu1 %v75_v4  ;;  %v82_v13 = vld [vmem:[%s1356_s3 + $0x28] sm:$0xff]  ;;  %v84_v16 = vld [vmem:[%s1356_s3 + $0x38] sm:$0xff]  ;;  %v53_v17 = vld [vmem:[%s1355_s0 + $0x40] sm:$0xff] }
   0x6   :  { %127 = vmatpush.msra.mxu0 %v58_v5  ;;  %v54_v14 = vld [vmem:[%s1355_s0 + $0x48] sm:$0xff]  ;;  %112 = vperm.xlu1 %703, %v82_v13   ;;  %v69_v18 = vld [vmem:[%s1355_s0 + $0xc0] sm:$0xff]  ;;  %v52_v19 = vld [vmem:[%s1355_s0 + $0x38] sm:$0xff] }
   0x7   :  { %168 = vmatpush.msra.mxu1 %v74_v6  ;;  %v70_v15 = vld [vmem:[%s1355_s0 + $0xc8] sm:$0xff]  ;;  %122 = vperm.xlu0 %702, %v84_v16   ;;  %v68_v20 = vld [vmem:[%s1355_s0 + $0xb8] sm:$0xff]  ;;  %v81_v21 = vld [vmem:[%s1356_s3 + $0x20] sm:$0xff] }
   0x8   :  { %128 = vmatpush.msra.mxu0 %v57_v7  ;;  %v51_v22 = vld [vmem:[%s1355_s0 + $0x30] sm:$0xff]  ;;  %v50_v25 = vld [vmem:[%s1355_s0 + $0x28] sm:$0xff]  ;;  %v49_v27 = vld [vmem:[%s1355_s0 + $0x20] sm:$0xff] }
   0x9   :  { %169 = vmatpush.msra.mxu1 %v73_v8  ;;  %v67_v23 = vld [vmem:[%s1355_s0 + $0xb0] sm:$0xff]  ;;  %v66_v26 = vld [vmem:[%s1355_s0 + $0xa8] sm:$0xff]  ;;  %v65_v28 = vld [vmem:[%s1355_s0 + $0xa0] sm:$0xff] }
   0xa   :  { %129 = vmatpush.msra.mxu0 %v56_v9  ;;  %v83_v24 = vld [vmem:[%s1356_s3 + $0x30] sm:$0xff]  ;;  %v48_v29 = vld [vmem:[%s1355_s0 + $0x18] sm:$0xff]  ;;  %v77_v31 = vld [vmem:[%s1356_s3] sm:$0xff] }
   0xb   :  { %170 = vmatpush.msra.mxu1 %v72_v10  ;;  %v64_v30 = vld [vmem:[%s1355_s0 + $0x98] sm:$0xff]  ;;  %v47_v32 = vld [vmem:[%s1355_s0 + $0x10] sm:$0xff]  ;;  %v78_v34 = vld [vmem:[%s1356_s3 + $0x8] sm:$0xff] }
   0xc   :  { %130 = vmatpush.msra.mxu0 %v55_v11  ;;  %v63_v33 = vld [vmem:[%s1355_s0 + $0x90] sm:$0xff]  ;;  %v46_v35 = vld [vmem:[%s1355_s0 + $0x8] sm:$0xff]  ;;  %v45_v37 = vld [vmem:[%s1355_s0] sm:$0xff] }
   0xd   :  { %171 = vmatpush.msra.mxu1 %v71_v12  ;;  %v62_v36 = vld [vmem:[%s1355_s0 + $0x88] sm:$0xff]  ;;  %v61_v38 = vld [vmem:[%s1355_s0 + $0x80] sm:$0xff]  ;;  %v31_v41 = vld [vmem:[%s1357_s2 + $0x10] sm:$0xff] }
   0xe   :  { %131 = vmatpush.msra.mxu0 %v54_v14  ;;  %107 = vperm.xlu1 %703, %v81_v21   ;;  %v29_v39 = vld [vmem:[%s1357_s2] sm:$0xff]  ;;  %v30_v40 = vld [vmem:[%s1357_s2 + $0x8] sm:$0xff]  ;;  %v32_v42 = vld [vmem:[%s1357_s2 + $0x18] sm:$0xff] }
   0xf   :  { %172 = vmatpush.msra.mxu1 %v70_v15  ;;  %117 = vperm.xlu0 %702, %v83_v24   ;;  %v80_v43 = vld [vmem:[%s1356_s3 + $0x18] sm:$0xff]  ;;  %v33_v44 = vld [vmem:[%s1357_s2 + $0x20] sm:$0xff]  ;;  %v34_v45 = vld [vmem:[%s1357_s2 + $0x28] sm:$0xff] }
  0x10   :  { %132 = vmatpush.msra.mxu0 %v53_v17  ;;  %102 = vperm.xlu2 %704, %v80_v43   ;;  %v79_v46 = vld [vmem:[%s1356_s3 + $0x10] sm:$0xff]  ;;  %v36_v48 = vld [vmem:[%s1357_s2 + $0x38] sm:$0xff]  ;;  %v232_v49 = vld [vmem:[%s1358_s5] sm:$0xff] }
  0x11   :  { %173 = vmatpush.msra.mxu1 %v69_v18  ;;  %v35_v47 = vld [vmem:[%s1357_s2 + $0x30] sm:$0xff]  ;;  %v37_v50 = vld [vmem:[%s1357_s2 + $0x40] sm:$0xff]  ;;  %v38_v51 = vld [vmem:[%s1357_s2 + $0x48] sm:$0xff] }
  0x12   :  { %133 = vmatpush.msra.mxu0 %v52_v19  ;;  %v39_v52 = vld [vmem:[%s1357_s2 + $0x50] sm:$0xff]  ;;  %v40_v53 = vld [vmem:[%s1357_s2 + $0x58] sm:$0xff]  ;;  %v41_v54 = vld [vmem:[%s1357_s2 + $0x60] sm:$0xff] }
  0x13   :  { %174 = vmatpush.msra.mxu1 %v68_v20  ;;  %v42_v55 = vld [vmem:[%s1357_s2 + $0x68] sm:$0xff]  ;;  %v43_v56 = vld [vmem:[%s1357_s2 + $0x70] sm:$0xff]  ;;  %v44_v57 = vld [vmem:[%s1357_s2 + $0x78] sm:$0xff] }
  0x14   :  { %134 = vmatpush.msra.mxu0 %v51_v22  ;;  %v279_v15 = vld [vmem:[%s1359_s6 + $0x78] sm:$0xff]  ;;  %v278_v16 = vld [vmem:[%s1359_s6 + $0x70] sm:$0xff]  ;;  %v277_v18 = vld [vmem:[%s1359_s6 + $0x68] sm:$0xff] }
  0x15   :  { %175 = vmatpush.msra.mxu1 %v67_v23  ;;  %280 = vmatpush.msra.mxu3 %v279_v15  ;;  %v276_v19 = vld [vmem:[%s1359_s6 + $0x60] sm:$0xff]  ;;  %v275_v21 = vld [vmem:[%s1359_s6 + $0x58] sm:$0xff]  ;;  %v603_v15 = vld [vmem:[%s1359_s6 + $0xf0] sm:$0xff] }
  0x16   :  { %135 = vmatpush.msra.mxu0 %v50_v25  ;;  %87 = vperm.xlu1 %703, %v77_v31   ;;  %v274_v25 = vld [vmem:[%s1359_s6 + $0x50] sm:$0xff] }
  0x17   :  { %176 = vmatpush.msra.mxu1 %v66_v26  ;;  %92 = vperm.xlu0 %702, %v78_v34  }
  0x18   :  { %136 = vmatpush.msra.mxu0 %v49_v27  ;;  %97 = vperm.xlu2 %704, %v79_v46  }
  0x19   :  { %177 = vmatpush.msra.mxu1 %v65_v28  ;;  %281 = vmatpush.msra.mxu3 %v278_v16  ;;  %v668_v16 = vld [vmem:[%s1359_s6 + $0x2f8] sm:$0xff] }
  0x1a   :  { %137 = vmatpush.msra.mxu0 %v48_v29 }
  0x1b   :  { %178 = vmatpush.msra.mxu1 %v64_v30  ;;  %282 = vmatpush.msra.mxu3 %v277_v18  ;;  %v273_v30 = vld [vmem:[%s1359_s6 + $0x48] sm:$0xff] }
  0x1c   :  { %138 = vmatpush.msra.mxu0 %v47_v32  ;;  %v602_v18 = vld [vmem:[%s1359_s6 + $0xe8] sm:$0xff] }
  0x1d   :  { %179 = vmatpush.msra.mxu1 %v63_v33  ;;  %283 = vmatpush.msra.mxu3 %v276_v19  ;;  %v651_v19 = vld [vmem:[%s1359_s6 + $0x270] sm:$0xff] }
  0x1e   :  { %139 = vmatpush.msra.mxu0 %v46_v35  ;;  %v222_v35 = vld [vmem:[%s1360_s1 + $0x38] sm:$0xff] }
  0x1f   :  { %180 = vmatpush.msra.mxu1 %v62_v36  ;;  %284 = vmatpush.msra.mxu3 %v275_v21  ;;  %v272_v36 = vld [vmem:[%s1359_s6 + $0x40] sm:$0xff] }
  0x20   :  { %140 = vmatpush.msra.mxu0 %v45_v37  ;;  %235 = vperm.xlu2 %704, %v232_v49   ;;  %v617_v21 = vld [vmem:[%s1359_s6 + $0x160] sm:$0xff] }
  0x21   :  { %181 = vmatpush.msra.mxu1 %v61_v38  ;;  %141 = vmatmul.f32.vlgmr.msra.gmra.mxu0 %v29_v39 }
  0x22   :  { %182 = vmatmul.f32.vlgmr.msra.gmra.mxu1 %v30_v40  ;;  %285 = vmatpush.msra.mxu3 %v274_v25  ;;  %v616_v25 = vld [vmem:[%s1359_s6 + $0x158] sm:$0xff] }
  0x23   :  { %481 = vmatpush.msrb.mxu1 %v668_v16  ;;  %v606_v16 = vld [vmem:[%s1359_s6 + $0x108] sm:$0xff] }
  0x24   :  { %286 = vmatpush.msra.mxu3 %v273_v30  ;;  %v599_v30 = vld [vmem:[%s1359_s6 + $0xd0] sm:$0xff] }
  0x26   :  { %287 = vmatpush.msra.mxu3 %v272_v36  ;;  %v663_v36 = vld [vmem:[%s1359_s6 + $0x2d0] sm:$0xff] }
  0x29   :  { %144 = vmatmul.f32.gmra.mxu0 %v31_v41  ;;  %v221_v41 = vld [vmem:[%s1360_s1 + $0x30] sm:$0xff] }
  0x2a   :  { %185 = vmatmul.f32.gmra.mxu1 %v32_v42  ;;  %v271_v42 = vld [vmem:[%s1359_s6 + $0x38] sm:$0xff] }
  0x2b   :  { %288 = vmatpush.msra.mxu3 %v271_v42  ;;  %v596_v42 = vld [vmem:[%s1359_s6 + $0xb8] sm:$0xff] }
  0x31   :  { %147 = vmatmul.f32.gmra.mxu0 %v33_v44 }
  0x32   :  { %188 = vmatmul.f32.gmra.mxu1 %v34_v45 }
  0x39   :  { %150 = vmatmul.f32.gmra.mxu0 %v35_v47  ;;  %v220_v47 = vld [vmem:[%s1360_s1 + $0x28] sm:$0xff] }
  0x3a   :  { %191 = vmatmul.f32.gmra.mxu1 %v36_v48  ;;  %v270_v48 = vld [vmem:[%s1359_s6 + $0x30] sm:$0xff] }
  0x3b   :  { %289 = vmatpush.msra.mxu3 %v270_v48  ;;  %v660_v48 = vld [vmem:[%s1359_s6 + $0x2b8] sm:$0xff] }
  0x41   :  { %153 = vmatmul.f32.gmra.mxu0 %v37_v50 }
  0x42   :  { %194 = vmatmul.f32.gmra.mxu1 %v38_v51 }
  0x49   :  { %156 = vmatmul.f32.gmra.mxu0 %v39_v52  ;;  %v219_v52 = vld [vmem:[%s1360_s1 + $0x20] sm:$0xff] }
  0x4a   :  { %197 = vmatmul.f32.gmra.mxu1 %v40_v53  ;;  %v269_v53 = vld [vmem:[%s1359_s6 + $0x28] sm:$0xff] }
  0x4b   :  { %290 = vmatpush.msra.mxu3 %v269_v53  ;;  %v609_v53 = vld [vmem:[%s1359_s6 + $0x120] sm:$0xff] }
  0x51   :  { %159 = vmatmul.f32.gmra.mxu0 %v41_v54 }
  0x52   :  { %200 = vmatmul.f32.gmra.mxu1 %v42_v55 }
  0x59   :  { %162 = vmatmul.f32.gmra.mxu0 %v43_v56 }
  0x5a   :  { %203 = vmatmul.f32.gmra.mxu1 %v44_v57  ;;  %v218_v57 = vld [vmem:[%s1360_s1 + $0x18] sm:$0xff] }
  0x6a   :  { %v103_v12 = vpop.permute.xlu2 %102 }
  0x72   :  { %v98_v29 = vpop.permute.xlu2 %97 }
  0x78   :  { %v113_v58 = vpop.permute.xlu1 %112 }
  0x79   :  { %v123_v9 = vpop.permute.xlu0 %122 }
  0x80   :  { %v108_v59 = vpop.permute.xlu1 %107 }
  0x81   :  { %v118_v17 = vpop.permute.xlu0 %117 }
  0x88   :  { %v88_v60 = vpop.permute.xlu1 %87 }
  0x89   :  { %v93_v34 = vpop.permute.xlu0 %92 }
  0x9e   :  { %v142_v61 = vpop.f32.mrf.mxu0 }
  0x9f   :  { %v183_v62 = vpop.f32.mrf.mxu1  ;;  %v143_v63 = vadd.f32 %v142_v61, %v88_v60  ;;  %v217_v61 = vld [vmem:[%s1360_s1 + $0x10] sm:$0xff] }
  0xa1   :  { %v922_v0 = vadd.f32 %v183_v62, %v143_v63  ;;  %v267_v62 = vld [vmem:[%s1359_s6 + $0x18] sm:$0xff] }
  0xa6   :  { %v145_v1 = vpop.f32.mrf.mxu0 }
  0xa7   :  { %v924_v2 = vpop.f32.mrf.mxu1  ;;  %v146_v43 = vadd.f32 %v145_v1, %v93_v34  ;;  %v598_v34 = vld [vmem:[%s1359_s6 + $0xc8] sm:$0xff] }
  0xa9   :  { %v187_v54 = vadd.f32 %v924_v2, %v146_v43  ;;  %v216_v2 = vld [vmem:[%s1360_s1 + $0x8] sm:$0xff]  ;;  %v645_v43 = vld [vmem:[%s1359_s6 + $0x240] sm:$0xff] }
  0xab   :  { %v208_v63 = vmax.f32 %v187_v54, 0.0  ;;  %v593_v54 = vld [vmem:[%s1359_s6 + $0xa0] sm:$0xff] }
  0xae   :  { %v148_v3 = vpop.f32.mrf.mxu0 }
  0xaf   :  { %v189_v4 = vpop.f32.mrf.mxu1  ;;  %v149_v37 = vadd.f32 %v148_v3, %v98_v29  ;;  %v266_v3 = vld [vmem:[%s1359_s6 + $0x10] sm:$0xff] }
  0xb0   :  { %v615_v29 = vld [vmem:[%s1359_s6 + $0x150] sm:$0xff] }
  0xb1   :  { %v190_v49 = vadd.f32 %v189_v4, %v149_v37  ;;  %v207_v4 = vmax.f32 %v922_v0, 0.0  ;;  %v613_v37 = vld [vmem:[%s1359_s6 + $0x140] sm:$0xff] }
  0xb6   :  { %v151_v5 = vpop.f32.mrf.mxu0 }
  0xb7   :  { %v192_v6 = vpop.f32.mrf.mxu1  ;;  %v152_v31 = vadd.f32 %v151_v5, %v103_v12  ;;  %v652_v12 = vld [vmem:[%s1359_s6 + $0x278] sm:$0xff] }
  0xb8   :  { %441 = vmatpush.msrb.mxu0 %v652_v12  ;;  %v607_v12 = vld [vmem:[%s1359_s6 + $0x110] sm:$0xff] }
  0xb9   :  { %v193_v44 = vadd.f32 %v192_v6, %v152_v31  ;;  %v215_v6 = vld [vmem:[%s1360_s1] sm:$0xff]  ;;  %v648_v31 = vld [vmem:[%s1359_s6 + $0x258] sm:$0xff] }
  0xba   :  { %v223_v0 = vmul.f32 %v215_v6, %v207_v4  ;;  %442 = vmatpush.msrb.mxu0 %v651_v19  ;;  %v633_v4 = vld [vmem:[%s1359_s6 + $0x1e0] sm:$0xff]  ;;  %v631_v6 = vld [vmem:[%s1359_s6 + $0x1d0] sm:$0xff] }
  0xbb   :  { %v210_v55 = vmax.f32 %v193_v44, 0.0  ;;  %v661_v44 = vld [vmem:[%s1359_s6 + $0x2c0] sm:$0xff]  ;;  %v655_v19 = vld [vmem:[%s1359_s6 + $0x290] sm:$0xff] }
  0xbd   :  { %v226_v1 = vmul.f32 %v218_v57, %v210_v55  ;;  %v642_v55 = vld [vmem:[%s1359_s6 + $0x228] sm:$0xff]  ;;  %v608_v57 = vld [vmem:[%s1359_s6 + $0x118] sm:$0xff] }
  0xbe   :  { %v154_v7 = vpop.f32.mrf.mxu0 }
  0xbf   :  { %v195_v8 = vpop.f32.mrf.mxu1  ;;  %v155_v26 = vadd.f32 %v154_v7, %v108_v59  ;;  %v209_v59 = vmax.f32 %v190_v49, 0.0  ;;  %v265_v7 = vld [vmem:[%s1359_s6 + $0x8] sm:$0xff] }
  0xc0   :  { %v610_v49 = vld [vmem:[%s1359_s6 + $0x128] sm:$0xff] }
  0xc1   :  { %v196_v38 = vadd.f32 %v195_v8, %v155_v26  ;;  %v225_v5 = vmul.f32 %v217_v61, %v209_v59  ;;  %v224_v8 = vmul.f32 %v216_v2, %v208_v63  ;;  %v600_v26 = vld [vmem:[%s1359_s6 + $0xd8] sm:$0xff]  ;;  %v641_v59 = vld [vmem:[%s1359_s6 + $0x220] sm:$0xff]  ;;  %v591_v61 = vld [vmem:[%s1359_s6 + $0x90] sm:$0xff] }
  0xc2   :  { %v589_v63 = vld [vmem:[%s1359_s6 + $0x80] sm:$0xff]  ;;  %v635_v2 = vld [vmem:[%s1359_s6 + $0x1f0] sm:$0xff] }
  0xc3   :  { %v211_v50 = vmax.f32 %v196_v38, 0.0  ;;  %v597_v38 = vld [vmem:[%s1359_s6 + $0xc0] sm:$0xff] }
  0xc5   :  { %v227_v60 = vmul.f32 %v219_v52, %v211_v50  ;;  %v594_v50 = vld [vmem:[%s1359_s6 + $0xa8] sm:$0xff]  ;;  %v659_v52 = vld [vmem:[%s1359_s6 + $0x2b0] sm:$0xff] }
  0xc6   :  { %v157_v10 = vpop.f32.mrf.mxu0 }
  0xc7   :  { %v198_v11 = vpop.f32.mrf.mxu1  ;;  %v158_v22 = vadd.f32 %v157_v10, %v113_v58  ;;  %v268_v58 = vld [vmem:[%s1359_s6 + $0x20] sm:$0xff] }
  0xc8   :  { %291 = vmatpush.msra.mxu3 %v268_v58  ;;  %v231_v10 = vld [vmem:[%s1361_s4] sm:$0xff]  ;;  %v592_v58 = vld [vmem:[%s1359_s6 + $0x98] sm:$0xff] }
  0xc9   :  { %v199_v32 = vadd.f32 %v198_v11, %v158_v22  ;;  %v620_v11 = vld [vmem:[%s1359_s6 + $0x178] sm:$0xff]  ;;  %v601_v22 = vld [vmem:[%s1359_s6 + $0xe0] sm:$0xff] }
  0xca   :  { %292 = vmatpush.msra.mxu3 %v267_v62  ;;  %v590_v62 = vld [vmem:[%s1359_s6 + $0x88] sm:$0xff] }
  0xcb   :  { %v212_v45 = vmax.f32 %v199_v32, 0.0  ;;  %v664_v32 = vld [vmem:[%s1359_s6 + $0x2d8] sm:$0xff] }
  0xcc   :  { %293 = vmatpush.msra.mxu3 %v266_v3  ;;  %v634_v3 = vld [vmem:[%s1359_s6 + $0x1e8] sm:$0xff] }
  0xcd   :  { %v228_v56 = vmul.f32 %v220_v47, %v212_v45  ;;  %v611_v45 = vld [vmem:[%s1359_s6 + $0x130] sm:$0xff]  ;;  %v644_v47 = vld [vmem:[%s1359_s6 + $0x238] sm:$0xff] }
  0xce   :  { %v160_v13 = vpop.f32.mrf.mxu0  ;;  %294 = vmatpush.msra.mxu3 %v265_v7  ;;  %v630_v7 = vld [vmem:[%s1359_s6 + $0x1c8] sm:$0xff] }
  0xcf   :  { %v201_v14 = vpop.f32.mrf.mxu1  ;;  %v161_v20 = vadd.f32 %v160_v13, %v118_v17  ;;  %v604_v13 = vld [vmem:[%s1359_s6 + $0xf8] sm:$0xff]  ;;  %v618_v17 = vld [vmem:[%s1359_s6 + $0x168] sm:$0xff] }
  0xd1   :  { %v202_v27 = vadd.f32 %v201_v14, %v161_v20  ;;  %v619_v14 = vld [vmem:[%s1359_s6 + $0x170] sm:$0xff] }
  0xd2   :  { %v667_v20 = vld [vmem:[%s1359_s6 + $0x2f0] sm:$0xff] }
  0xd3   :  { %v213_v39 = vmax.f32 %v202_v27, 0.0  ;;  %482 = vmatpush.msrb.mxu1 %v667_v20  ;;  %v649_v27 = vld [vmem:[%s1359_s6 + $0x260] sm:$0xff] }
  0xd4   :  { %v605_v20 = vld [vmem:[%s1359_s6 + $0x100] sm:$0xff] }
  0xd5   :  { %v229_v51 = vmul.f32 %v221_v41, %v213_v39  ;;  %v646_v39 = vld [vmem:[%s1359_s6 + $0x248] sm:$0xff]  ;;  %v612_v41 = vld [vmem:[%s1359_s6 + $0x138] sm:$0xff] }
  0xd6   :  { %v163_v23 = vpop.f32.mrf.mxu0 }
  0xd7   :  { %v204_v24 = vpop.f32.mrf.mxu1  ;;  %v164_v28 = vadd.f32 %v163_v23, %v123_v9  ;;  %v264_v9 = vld [vmem:[%s1359_s6] sm:$0xff]  ;;  %v650_v23 = vld [vmem:[%s1359_s6 + $0x268] sm:$0xff] }
  0xd8   :  { %295 = vmatpush.msra.mxu3 %v264_v9  ;;  %443 = vmatpush.msrb.mxu0 %v650_v23  ;;  %v628_v9 = vld [vmem:[%s1359_s6 + $0x1b8] sm:$0xff]  ;;  %v654_v23 = vld [vmem:[%s1359_s6 + $0x288] sm:$0xff] }
  0xd9   :  { %v205_v33 = vadd.f32 %v204_v24, %v164_v28  ;;  %v666_v24 = vld [vmem:[%s1359_s6 + $0x2e8] sm:$0xff]  ;;  %v665_v28 = vld [vmem:[%s1359_s6 + $0x2e0] sm:$0xff] }
  0xda   :  { %361 = vmatpush.msrb.mxu3 %v620_v11  ;;  %483 = vmatpush.msrb.mxu1 %v666_v24  ;;  %v625_v11 = vld [vmem:[%s1359_s6 + $0x1a0] sm:$0xff] }
  0xdb   :  { %v214_v40 = vmax.f32 %v205_v33, 0.0  ;;  %444 = vmatpush.msrb.mxu0 %v649_v27  ;;  %v614_v33 = vld [vmem:[%s1359_s6 + $0x148] sm:$0xff]  ;;  %v621_v24 = vld [vmem:[%s1359_s6 + $0x180] sm:$0xff]  ;;  %v236_v27 = vpop.permute.xlu2 %235 }
  0xdc   :  { %362 = vmatpush.msrb.mxu3 %v619_v14  ;;  %484 = vmatpush.msrb.mxu1 %v665_v28  ;;  %v640_v14 = vld [vmem:[%s1359_s6 + $0x218] sm:$0xff] }
  0xdd   :  { %v230_v46 = vmul.f32 %v222_v35, %v214_v40  ;;  %445 = vmatpush.msrb.mxu0 %v648_v31  ;;  %v647_v35 = vld [vmem:[%s1359_s6 + $0x250] sm:$0xff]  ;;  %v662_v40 = vld [vmem:[%s1359_s6 + $0x2c8] sm:$0xff]  ;;  %v684_v31 = vld [vmem:[%s1359_s6 + $0x378] sm:$0xff] }
  0xde   :  { %363 = vmatpush.msrb.mxu3 %v618_v17  ;;  %485 = vmatpush.msrb.mxu1 %v664_v32  ;;  %v623_v17 = vld [vmem:[%s1359_s6 + $0x190] sm:$0xff] }
  0xdf   :  { %250 = vmatpush.msra.mxu2 %v230_v46  ;;  %446 = vmatpush.msrb.mxu0 %v647_v35  ;;  %v595_v46 = vld [vmem:[%s1359_s6 + $0xb0] sm:$0xff] }
  0xe0   :  { %364 = vmatpush.msrb.mxu3 %v617_v21  ;;  %486 = vmatpush.msrb.mxu1 %v663_v36  ;;  %v622_v21 = vld [vmem:[%s1359_s6 + $0x188] sm:$0xff]  ;;  %v683_v35 = vld [vmem:[%s1359_s6 + $0x370] sm:$0xff]  ;;  %v700_v36 = vld [vmem:[%s1359_s6 + $0x3f8] sm:$0xff] }
  0xe1   :  { %251 = vmatpush.msra.mxu2 %v229_v51  ;;  %447 = vmatpush.msrb.mxu0 %v646_v39  ;;  %v643_v51 = vld [vmem:[%s1359_s6 + $0x230] sm:$0xff]  ;;  %v681_v39 = vld [vmem:[%s1359_s6 + $0x360] sm:$0xff] }
  0xe2   :  { %365 = vmatpush.msrb.mxu3 %v616_v25  ;;  %487 = vmatpush.msrb.mxu1 %v662_v40  ;;  %v637_v25 = vld [vmem:[%s1359_s6 + $0x200] sm:$0xff]  ;;  %v698_v40 = vld [vmem:[%s1359_s6 + $0x3e8] sm:$0xff] }
  0xe3   :  { %252 = vmatpush.msra.mxu2 %v228_v56  ;;  %448 = vmatpush.msrb.mxu0 %v645_v43  ;;  %v658_v56 = vld [vmem:[%s1359_s6 + $0x2a8] sm:$0xff]  ;;  %v697_v43 = vld [vmem:[%s1359_s6 + $0x3e0] sm:$0xff] }
  0xe4   :  { %366 = vmatpush.msrb.mxu3 %v615_v29  ;;  %488 = vmatpush.msrb.mxu1 %v661_v44  ;;  %v679_v44 = vld [vmem:[%s1359_s6 + $0x350] sm:$0xff] }
  0xe5   :  { %253 = vmatpush.msra.mxu2 %v227_v60  ;;  %449 = vmatpush.msrb.mxu0 %v644_v47  ;;  %v657_v60 = vld [vmem:[%s1359_s6 + $0x2a0] sm:$0xff]  ;;  %v678_v47 = vld [vmem:[%s1359_s6 + $0x348] sm:$0xff] }
  0xe6   :  { %367 = vmatpush.msrb.mxu3 %v614_v33  ;;  %489 = vmatpush.msrb.mxu1 %v660_v48  ;;  %v695_v48 = vld [vmem:[%s1359_s6 + $0x3d0] sm:$0xff] }
  0xe7   :  { %254 = vmatpush.msra.mxu2 %v226_v1  ;;  %450 = vmatpush.msrb.mxu0 %v643_v51  ;;  %v636_v1 = vld [vmem:[%s1359_s6 + $0x1f8] sm:$0xff] }
  0xe8   :  { %368 = vmatpush.msrb.mxu3 %v613_v37  ;;  %490 = vmatpush.msrb.mxu1 %v659_v52  ;;  %v682_v37 = vld [vmem:[%s1359_s6 + $0x368] sm:$0xff]  ;;  %v676_v51 = vld [vmem:[%s1359_s6 + $0x338] sm:$0xff]  ;;  %v693_v52 = vld [vmem:[%s1359_s6 + $0x3c0] sm:$0xff] }
  0xe9   :  { %255 = vmatpush.msra.mxu2 %v225_v5  ;;  %451 = vmatpush.msrb.mxu0 %v642_v55  ;;  %v632_v5 = vld [vmem:[%s1359_s6 + $0x1d8] sm:$0xff]  ;;  %v674_v55 = vld [vmem:[%s1359_s6 + $0x328] sm:$0xff] }
  0xea   :  { %369 = vmatpush.msrb.mxu3 %v612_v41  ;;  %491 = vmatpush.msrb.mxu1 %v658_v56  ;;  %v691_v56 = vld [vmem:[%s1359_s6 + $0x3b0] sm:$0xff] }
  0xeb   :  { %256 = vmatpush.msra.mxu2 %v224_v8  ;;  %452 = vmatpush.msrb.mxu0 %v641_v59  ;;  %v629_v8 = vld [vmem:[%s1359_s6 + $0x1c0] sm:$0xff]  ;;  %v672_v59 = vld [vmem:[%s1359_s6 + $0x318] sm:$0xff] }
  0xec   :  { %370 = vmatpush.msrb.mxu3 %v611_v45  ;;  %492 = vmatpush.msrb.mxu1 %v657_v60  ;;  %v689_v60 = vld [vmem:[%s1359_s6 + $0x3a0] sm:$0xff] }
  0xed   :  { %257 = vmatpush.msra.mxu2 %v223_v0  ;;  %v627_v0 = vld [vmem:[%s1359_s6 + $0x1b0] sm:$0xff]  ;;  %453 = vmatpush.msrb.mxu0 %v640_v14 }
  0xee   :  { %588 = vmatmul.msk.f32.vlgmr.msra.gmra.mxu2 %vm238_vm0, %v231_v10  ;;  %371 = vmatpush.msrb.mxu3 %v610_v49  ;;  %v626_v10 = vld [vmem:[%s1359_s6 + $0x1a8] sm:$0xff]  ;;  %v677_v49 = vld [vmem:[%s1359_s6 + $0x340] sm:$0xff] }
  0xef   :  { %321 = vmatpush.msrb.mxu2 %v604_v13  ;;  %v624_v13 = vld [vmem:[%s1359_s6 + $0x198] sm:$0xff] }
  0xf0   :  { %372 = vmatpush.msrb.mxu3 %v609_v53  ;;  %v675_v53 = vld [vmem:[%s1359_s6 + $0x330] sm:$0xff] }
  0xf1   :  { %322 = vmatpush.msrb.mxu2 %v603_v15  ;;  %v656_v15 = vld [vmem:[%s1359_s6 + $0x298] sm:$0xff] }
  0xf2   :  { %373 = vmatpush.msrb.mxu3 %v608_v57  ;;  %493 = vmatpush.msrb.mxu1 %v656_v15  ;;  %v673_v57 = vld [vmem:[%s1359_s6 + $0x320] sm:$0xff] }
  0xf3   :  { %323 = vmatpush.msrb.mxu2 %v602_v18  ;;  %v639_v18 = vld [vmem:[%s1359_s6 + $0x210] sm:$0xff] }
  0xf4   :  { %374 = vmatpush.msrb.mxu3 %v607_v12  ;;  %454 = vmatpush.msrb.mxu0 %v639_v18 }
  0xf5   :  { %324 = vmatpush.msrb.mxu2 %v601_v22  ;;  %494 = vmatpush.msrb.mxu1 %v655_v19  ;;  %v638_v22 = vld [vmem:[%s1359_s6 + $0x208] sm:$0xff] }
  0xf6   :  { %375 = vmatpush.msrb.mxu3 %v606_v16  ;;  %455 = vmatpush.msrb.mxu0 %v638_v22 }
  0xf7   :  { %325 = vmatpush.msrb.mxu2 %v600_v26  ;;  %495 = vmatpush.msrb.mxu1 %v654_v23  ;;  %v653_v26 = vld [vmem:[%s1359_s6 + $0x280] sm:$0xff] }
  0xf8   :  { %376 = vmatpush.msrb.mxu3 %v605_v20  ;;  %456 = vmatpush.msrb.mxu0 %v637_v25 }
  0xf9   :  { %326 = vmatpush.msrb.mxu2 %v599_v30  ;;  %496 = vmatpush.msrb.mxu1 %v653_v26 }
  0xfb   :  { %327 = vmatpush.msrb.mxu2 %v598_v34 }
  0xfd   :  { %328 = vmatpush.msrb.mxu2 %v597_v38  ;;  %v699_v38 = vld [vmem:[%s1359_s6 + $0x3f0] sm:$0xff] }
  0xff   :  { %329 = vmatpush.msrb.mxu2 %v596_v42  ;;  %v680_v42 = vld [vmem:[%s1359_s6 + $0x358] sm:$0xff] }
 0x101   :  { %330 = vmatpush.msrb.mxu2 %v595_v46  ;;  %v696_v46 = vld [vmem:[%s1359_s6 + $0x3d8] sm:$0xff] }
 0x103   :  { %331 = vmatpush.msrb.mxu2 %v594_v50  ;;  %v694_v50 = vld [vmem:[%s1359_s6 + $0x3c8] sm:$0xff] }
 0x105   :  { %332 = vmatpush.msrb.mxu2 %v593_v54  ;;  %v692_v54 = vld [vmem:[%s1359_s6 + $0x3b8] sm:$0xff] }
 0x107   :  { %333 = vmatpush.msrb.mxu2 %v592_v58  ;;  %v690_v58 = vld [vmem:[%s1359_s6 + $0x3a8] sm:$0xff] }
 0x109   :  { %334 = vmatpush.msrb.mxu2 %v591_v61  ;;  %v671_v61 = vld [vmem:[%s1359_s6 + $0x310] sm:$0xff] }
 0x10b   :  { %335 = vmatpush.msrb.mxu2 %v590_v62  ;;  %v688_v62 = vld [vmem:[%s1359_s6 + $0x398] sm:$0xff] }
 0x10d   :  { %336 = vmatpush.msrb.mxu2 %v589_v63  ;;  %v670_v63 = vld [vmem:[%s1359_s6 + $0x308] sm:$0xff] }
 0x10f   :  { %401 = vmatpush.msra.mxu2 %v636_v1  ;;  %v687_v1 = vld [vmem:[%s1359_s6 + $0x390] sm:$0xff] }
 0x111   :  { %402 = vmatpush.msra.mxu2 %v635_v2  ;;  %v669_v2 = vld [vmem:[%s1359_s6 + $0x300] sm:$0xff] }
 0x113   :  { %403 = vmatpush.msra.mxu2 %v634_v3  ;;  %v686_v3 = vld [vmem:[%s1359_s6 + $0x388] sm:$0xff] }
 0x115   :  { %404 = vmatpush.msra.mxu2 %v633_v4 }
 0x117   :  { %405 = vmatpush.msra.mxu2 %v632_v5  ;;  %v685_v5 = vld [vmem:[%s1359_s6 + $0x380] sm:$0xff] }
 0x119   :  { %406 = vmatpush.msra.mxu2 %v631_v6 }
 0x11b   :  { %407 = vmatpush.msra.mxu2 %v630_v7 }
 0x11d   :  { %408 = vmatpush.msra.mxu2 %v629_v8  ;;  %v263_v8 = vld [vmem:[%s1362_s7] sm:$0x1] }
 0x11f   :  { %409 = vmatpush.msra.mxu2 %v628_v9 }
 0x121   :  { %410 = vmatpush.msra.mxu2 %v627_v0 }
 0x123   :  { %411 = vmatpush.msra.mxu2 %v626_v10 }
 0x125   :  { %412 = vmatpush.msra.mxu2 %v625_v11 }
 0x127   :  { %413 = vmatpush.msra.mxu2 %v624_v13 }
 0x129   :  { %414 = vmatpush.msra.mxu2 %v623_v17 }
 0x12b   :  { %415 = vmatpush.msra.mxu2 %v622_v21 }
 0x12d   :  { %416 = vmatpush.msra.mxu2 %v621_v24 }
 0x171   :  { %v259_v28 = vpop.f32.mrf.mxu2 }
 0x172   :  { %v260_v29 = vadd.f32 %v259_v28, %v236_v27 }
 0x174   :  { %v1243_v30 = vmax.f32 %v260_v29, 0.0 }
 0x176   :  { %296 = vmatmul.f32.vlgmr.msra.gmra.mxu3 %v1243_v30  ;;  %v319_v32 = vrot.slane %v1243_v30, 1  ;;  %v439_v33 = vrot.slane %v1243_v30, 4  ;;  %v479_v34 = vrot.slane %v1243_v30, 5  ;;  %v359_v41 = vrot.slane %v1243_v30, 2 }
 0x177   :  { %521 = vmatpush.msra.mxu3 %v684_v31  ;;  %v399_v45 = vrot.slane %v1243_v30, 3  ;;  %v519_v4 = vrot.slane %v1243_v30, 6  ;;  %v559_v6 = vrot.slane %v1243_v30, 7 }
 0x178   :  { %337 = vmatmul.f32.vlgmr.msrb.gmra.mxu2 %v319_v32  ;;  %457 = vmatmul.f32.vlgmr.msrb.gmra.mxu0 %v439_v33 }
 0x179   :  { %497 = vmatmul.f32.vlgmr.msrb.gmra.mxu1 %v479_v34  ;;  %522 = vmatpush.msra.mxu3 %v683_v35 }
 0x17a   :  { %561 = vmatpush.msrb.mxu2 %v700_v36 }
 0x17b   :  { %523 = vmatpush.msra.mxu3 %v682_v37 }
 0x17c   :  { %562 = vmatpush.msrb.mxu2 %v699_v38 }
 0x17d   :  { %524 = vmatpush.msra.mxu3 %v681_v39 }
 0x17e   :  { %563 = vmatpush.msrb.mxu2 %v698_v40  ;;  %377 = vmatmul.f32.vlgmr.msrb.gmra.mxu3 %v359_v41 }
 0x17f   :  { %525 = vmatpush.msra.mxu3 %v680_v42 }
 0x180   :  { %564 = vmatpush.msrb.mxu2 %v697_v43 }
 0x181   :  { %417 = vmatmul.f32.vlgmr.msra.gmra.mxu2 %v399_v45  ;;  %526 = vmatpush.msra.mxu3 %v679_v44 }
 0x182   :  { %565 = vmatpush.msrb.mxu2 %v696_v46 }
 0x183   :  { %527 = vmatpush.msra.mxu3 %v678_v47 }
 0x184   :  { %566 = vmatpush.msrb.mxu2 %v695_v48 }
 0x185   :  { %528 = vmatpush.msra.mxu3 %v677_v49 }
 0x186   :  { %567 = vmatpush.msrb.mxu2 %v694_v50 }
 0x187   :  { %529 = vmatpush.msra.mxu3 %v676_v51 }
 0x188   :  { %568 = vmatpush.msrb.mxu2 %v693_v52 }
 0x189   :  { %530 = vmatpush.msra.mxu3 %v675_v53 }
 0x18a   :  { %569 = vmatpush.msrb.mxu2 %v692_v54 }
 0x18b   :  { %531 = vmatpush.msra.mxu3 %v674_v55 }
 0x18c   :  { %570 = vmatpush.msrb.mxu2 %v691_v56 }
 0x18d   :  { %532 = vmatpush.msra.mxu3 %v673_v57 }
 0x18e   :  { %571 = vmatpush.msrb.mxu2 %v690_v58 }
 0x18f   :  { %533 = vmatpush.msra.mxu3 %v672_v59 }
 0x190   :  { %572 = vmatpush.msrb.mxu2 %v689_v60 }
 0x191   :  { %534 = vmatpush.msra.mxu3 %v671_v61 }
 0x192   :  { %573 = vmatpush.msrb.mxu2 %v688_v62 }
 0x193   :  { %535 = vmatpush.msra.mxu3 %v670_v63 }
 0x194   :  { %574 = vmatpush.msrb.mxu2 %v687_v1 }
 0x195   :  { %536 = vmatpush.msra.mxu3 %v669_v2 }
 0x196   :  { %575 = vmatpush.msrb.mxu2 %v686_v3  ;;  %537 = vmatmul.f32.vlgmr.msra.gmra.mxu3 %v519_v4 }
 0x198   :  { %576 = vmatpush.msrb.mxu2 %v685_v5 }
 0x199   :  { %577 = vmatmul.f32.vlgmr.msrb.gmra.mxu2 %v559_v6 }
 0x1f5   :  { %v458_v15 = vpop.f32.mrf.mxu0 }
 0x1f6   :  { %v498_v17 = vpop.f32.mrf.mxu1 }
 0x1f9   :  { %v297_v7 = vpop.f32.mrf.mxu3 }
 0x1fa   :  { %v300_v0 = vadd.f32 %v297_v7, %v263_v8 }
 0x1fb   :  { %v338_v9 = vpop.f32.mrf.mxu2 }
 0x1fc   :  { %v341_v11 = vadd.f32 %v338_v9, %v300_v0 }
 0x201   :  { %v378_v10 = vpop.f32.mrf.mxu3 }
 0x202   :  { %v381_v12 = vadd.f32 %v378_v10, %v341_v11 }
 0x204   :  { %v418_v13 = vpop.f32.mrf.mxu2 }
 0x205   :  { %v421_v14 = vadd.f32 %v418_v13, %v381_v12 }
 0x207   :  { %v461_v16 = vadd.f32 %v458_v15, %v421_v14 }
 0x209   :  { %v501_v18 = vadd.f32 %v498_v17, %v461_v16 }
 0x219   :  { %v538_v19 = vpop.f32.mrf.mxu3 }
 0x21a   :  { %v541_v20 = vadd.f32 %v538_v19, %v501_v18 }
 0x21c   :  { %v578_v21 = vpop.f32.mrf.mxu2 }
 0x21d   :  { %v581_v22 = vadd.f32 %v578_v21, %v541_v20 }
 0x21f   :  { %583 = vst.msk [vmem:[%s1363_s8] sm:$0x1] %vm582_vm1, %v581_v22 }

</bundles_post_ra>
